<compile_context>
chip_gen: v7x
topology: tpu7x:2x2x1
jax: 0.10.0
libtpu: 0.0.40
codegen_flags: <defaults>
</compile_context>

<pallas_src>
import jax
import jax.numpy as jnp
from jax.experimental import pallas as pl
from jax.experimental.pallas import tpu as pltpu

# logical layer widths (PyTorch module) and their lane-padded storage widths
H1, H2, H3, OUT_DIM = 180, 110, 55, 30
H1_PAD, H2_PAD, H3_PAD, OUT_PAD = 256, 128, 128, 128
EPS = 1e-6  # F.pairwise_distance default eps (added inside the norm)


def _round_up(x, m):
    return (x + m - 1) // m * m


def make_siamese_kernel(alpha: float, out_dim: int):
    """Build the fused kernel with alpha baked in as a compile-time constant."""
    alpha = float(alpha)

    def kernel(x1_ref, x2_ref,
               w1_ref, b1_ref, w2_ref, b2_ref,
               w3_ref, b3_ref, w4_ref, b4_ref,
               o1_ref, o2_ref, d_ref):
        def prelu(z):  # single-scalar PReLU (PyTorch default num_parameters=1)
            return jnp.where(z > 0, z, alpha * z)

        def branch(x_bf16):
            # bf16 MXU operands, f32 accumulate; bias/PReLU math stays f32.
            h = jnp.dot(x_bf16, w1_ref[...],
                        preferred_element_type=jnp.float32) + b1_ref[...]
            h = prelu(h)  # dropout(p=0.1) is identity at inference time
            h = jnp.dot(h.astype(jnp.bfloat16), w2_ref[...],
                        preferred_element_type=jnp.float32) + b2_ref[...]
            h = prelu(h)
            h = jnp.dot(h.astype(jnp.bfloat16), w3_ref[...],
                        preferred_element_type=jnp.float32) + b3_ref[...]
            h = prelu(h)
            return jnp.dot(h.astype(jnp.bfloat16), w4_ref[...],
                           preferred_element_type=jnp.float32) + b4_ref[...]

        out1 = branch(x1_ref[...].astype(jnp.bfloat16))
        out2 = branch(x2_ref[...].astype(jnp.bfloat16))

        # lane-dense (TM, 128) embedding stores; padded lanes are exactly 0
        o1_ref[...] = out1
        o2_ref[...] = out2

        # fused pairwise_distance epilogue (mask padded lanes so +eps on them
        # does not leak into the norm)
        lane = jax.lax.broadcasted_iota(jnp.int32, out1.shape, 1)
        diff = jnp.where(lane < out_dim, out1 - out2 + EPS, 0.0)
        d_ref[...] = jnp.sqrt(jnp.sum(diff * diff, axis=-1, keepdims=True))

    return kernel


def siamese_forward_pallas(input1, input2, params, *, tm=256):
    """Fused forward for both branches. Returns (output1, output2, distance)."""
    B, in_dim = input1.shape
    TM = min(tm, _round_up(B, 8))
    B_pad = _round_up(B, TM)
    if B_pad != B:
        pad = ((0, B_pad - B), (0, 0))
        input1 = jnp.pad(input1, pad)
        input2 = jnp.pad(input2, pad)

    grid = (B_pad // TM,)
    x_spec = pl.BlockSpec((TM, in_dim), lambda i: (i, 0))
    out_spec = pl.BlockSpec((TM, OUT_PAD), lambda i: (i, 0))
    dist_spec = pl.BlockSpec((TM, 1), lambda i: (i, 0))

    def resident(arr):  # full-array block, constant index -> stays in VMEM
        return pl.BlockSpec(arr.shape, lambda i: (0, 0))

    kernel = make_siamese_kernel(params["alpha"], OUT_DIM)

    out1_p, out2_p, dist_p = pl.pallas_call(
        kernel,
        grid=grid,
        in_specs=[x_spec, x_spec,
                  resident(params["w1"]), resident(params["b1"]),
                  resident(params["w2"]), resident(params["b2"]),
                  resident(params["w3"]), resident(params["b3"]),
                  resident(params["w4"]), resident(params["b4"])],
        out_specs=(out_spec, out_spec, dist_spec),
        out_shape=(jax.ShapeDtypeStruct((B_pad, OUT_PAD), jnp.float32),
                   jax.ShapeDtypeStruct((B_pad, OUT_PAD), jnp.float32),
                   jax.ShapeDtypeStruct((B_pad, 1), jnp.float32)),
        compiler_params=pltpu.CompilerParams(
            dimension_semantics=("parallel",)),
    )(input1, input2,
      params["w1"], params["b1"], params["w2"], params["b2"],
      params["w3"], params["b3"], params["w4"], params["b4"])

    return (out1_p[:B, :OUT_DIM], out2_p[:B, :OUT_DIM], dist_p[:B, 0])


def siamese_forward(input1, input2, params):
    """Equivalent of SiameseNetwork.forward: returns (output1, output2)."""
    o1, o2, _ = siamese_forward_pallas(input1, input2, params)
    return o1, o2


def siamese_predict(input1, input2, params):
    """forward + F.pairwise_distance, distance computed in-kernel."""
    _, _, dist = siamese_forward_pallas(input1, input2, params)
    return dist


def init_params(key, inputsize):
    """Deterministic init matching SiameseNetwork layer shapes.

    Weights stored as (in, out) (transpose of PyTorch), zero-padded to
    lane-aligned widths, bf16 for the MXU. Biases stay f32, zero in padded
    columns so padded lanes remain exactly 0 through PReLU.
    """
    logical = [(inputsize, H1), (H1, H2), (H2, H3), (H3, OUT_DIM)]
    padded = [(inputsize, H1_PAD), (H1_PAD, H2_PAD),
              (H2_PAD, H3_PAD), (H3_PAD, OUT_PAD)]
    params = {}
    for i, ((fi, fo), (pi, po)) in enumerate(zip(logical, padded), start=1):
        key, kw, kb = jax.random.split(key, 3)
        bound = 1.0 / (fi ** 0.5)
        w = jax.random.uniform(kw, (fi, fo), jnp.float32, -bound, bound)
        b = jax.random.uniform(kb, (1, fo), jnp.float32, -bound, bound)
        w_pad = jnp.zeros((pi, po), jnp.float32).at[:fi, :fo].set(w)
        b_pad = jnp.zeros((1, po), jnp.float32).at[:, :fo].set(b)
        params[f"w{i}"] = w_pad.astype(jnp.bfloat16)
        params[f"b{i}"] = b_pad
    params["alpha"] = 0.25  # PReLU default init, baked into the kernel
    return params


def siamese_forward_ref(input1, input2, params):
    """Pure-JAX reference with identical numerics (bf16 operands, f32 acc)."""
    alpha = params["alpha"]

    def prelu(z):
        return jnp.where(z > 0, z, alpha * z)

    def once(x):
        h = x
        for i in range(1, 5):
            h = jnp.dot(h.astype(jnp.bfloat16), params[f"w{i}"],
                        preferred_element_type=jnp.float32) + params[f"b{i}"]
            if i < 4:
                h = prelu(h)
        return h[:, :OUT_DIM]

    o1, o2 = once(input1), once(input2)
    d = jnp.sqrt(jnp.sum((o1 - o2 + EPS) ** 2, axis=-1))
    return o1, o2, d


if __name__ == "__main__":
    inputsize = 32   # SiameseNetwork(inputsize=32, end_dim=2); end_dim unused in forward
    batch = 4

    key = jax.random.PRNGKey(0)
    key, k1, k2, kp = jax.random.split(key, 4)
    input1 = jax.random.normal(k1, (batch, inputsize), jnp.float32)
    input2 = jax.random.normal(k2, (batch, inputsize), jnp.float32)

    params = init_params(kp, inputsize)

    out1, out2, dist = siamese_forward_pallas(input1, input2, params)
    jax.block_until_ready((out1, out2, dist))

    ref1, ref2, refd = siamese_forward_ref(input1, input2, params)
    assert out1.shape == (batch, OUT_DIM) and out2.shape == (batch, OUT_DIM)
    assert dist.shape == (batch,)
    assert jnp.allclose(out1, ref1, atol=1e-3, rtol=1e-3)
    assert jnp.allclose(out2, ref2, atol=1e-3, rtol=1e-3)
    assert jnp.allclose(dist, refd, atol=1e-3, rtol=1e-3)

    # module-parity wrappers
    o1, o2 = siamese_forward(input1, input2, params)
    _ = jax.block_until_ready(siamese_predict(input1, input2, params))

    # TODO(synk): fc5..fc8 and training-mode dropout are not used by forward();
    # they are intentionally not materialized.
    print("KERNEL_OK")
</pallas_src>

<mosaic_0001>
module attributes {stable_mosaic.version = 11 : i64} {
  func.func @kernel(%arg0: i32, %arg1: memref<8x32xf32, #tpu.memory_space<vmem>>, %arg2: memref<8x32xf32, #tpu.memory_space<vmem>>, %arg3: memref<32x256xbf16, #tpu.memory_space<vmem>>, %arg4: memref<1x256xf32, #tpu.memory_space<vmem>>, %arg5: memref<256x128xbf16, #tpu.memory_space<vmem>>, %arg6: memref<1x128xf32, #tpu.memory_space<vmem>>, %arg7: memref<128x128xbf16, #tpu.memory_space<vmem>>, %arg8: memref<1x128xf32, #tpu.memory_space<vmem>>, %arg9: memref<128x128xbf16, #tpu.memory_space<vmem>>, %arg10: memref<1x128xf32, #tpu.memory_space<vmem>>, %arg11: memref<8x128xf32, #tpu.memory_space<vmem>>, %arg12: memref<8x128xf32, #tpu.memory_space<vmem>>, %arg13: memref<8x1xf32, #tpu.memory_space<vmem>>) attributes {dimension_semantics = [#tpu.dimension_semantics<parallel>], iteration_bounds = array<i64: 1>, scalar_prefetch = 0 : i64, scratch_operands = 0 : i64, tpu.core_type = #tpu.core_type<tc>, window_params = [{transform_indices = @transform_0, window_bounds = array<i64: 8, 32>}, {transform_indices = @transform_1, window_bounds = array<i64: 8, 32>}, {pipeline_mode = #tpu.pipeline_mode<synchronous>, transform_indices = @transform_2, window_bounds = array<i64: 32, 256>}, {pipeline_mode = #tpu.pipeline_mode<synchronous>, transform_indices = @transform_3, window_bounds = array<i64: 1, 256>}, {pipeline_mode = #tpu.pipeline_mode<synchronous>, transform_indices = @transform_4, window_bounds = array<i64: 256, 128>}, {pipeline_mode = #tpu.pipeline_mode<synchronous>, transform_indices = @transform_5, window_bounds = array<i64: 1, 128>}, {pipeline_mode = #tpu.pipeline_mode<synchronous>, transform_indices = @transform_6, window_bounds = array<i64: 128, 128>}, {pipeline_mode = #tpu.pipeline_mode<synchronous>, transform_indices = @transform_7, window_bounds = array<i64: 1, 128>}, {pipeline_mode = #tpu.pipeline_mode<synchronous>, transform_indices = @transform_8, window_bounds = array<i64: 128, 128>}, {pipeline_mode = #tpu.pipeline_mode<synchronous>, transform_indices = @transform_9, window_bounds = array<i64: 1, 128>}, {transform_indices = @transform_10, window_bounds = array<i64: 8, 128>}, {transform_indices = @transform_11, window_bounds = array<i64: 8, 128>}, {transform_indices = @transform_12, window_bounds = array<i64: 8, 1>}]} {
    %c0 = arith.constant 0 : index
    %c0_0 = arith.constant 0 : index
    %0 = vector.load %arg1[%c0, %c0_0] : memref<8x32xf32, #tpu.memory_space<vmem>>, vector<8x32xf32>
    %1 = arith.truncf %0 : vector<8x32xf32> to vector<8x32xbf16>
    %c0_1 = arith.constant 0 : index
    %c0_2 = arith.constant 0 : index
    %2 = vector.load %arg3[%c0_1, %c0_2] : memref<32x256xbf16, #tpu.memory_space<vmem>>, vector<32x256xbf16>
    %cst = arith.constant dense<0.000000e+00> : vector<8x256xf32>
    %3 = tpu.matmul %1, %2, %cst {dimension_numbers = #tpu.dot_dimension_numbers<[1], [0], [0], [1], [0, 0, 1, 1], [], []>} : vector<8x32xbf16>, vector<32x256xbf16>, vector<8x256xf32> -> vector<8x256xf32>
    %c0_3 = arith.constant 0 : index
    %c0_4 = arith.constant 0 : index
    %4 = vector.load %arg4[%c0_3, %c0_4] : memref<1x256xf32, #tpu.memory_space<vmem>>, vector<1x256xf32>
    %5 = vector.broadcast %4 : vector<1x256xf32> to vector<8x256xf32>
    %6 = arith.addf %3, %5 : vector<8x256xf32>
    %cst_5 = arith.constant 0.000000e+00 : f32
    %7 = vector.broadcast %cst_5 : f32 to vector<8x256xf32>
    %8 = arith.cmpf ogt, %6, %7 : vector<8x256xf32>
    %cst_6 = arith.constant 2.500000e-01 : f32
    %9 = vector.broadcast %cst_6 : f32 to vector<8x256xf32>
    %10 = arith.mulf %9, %6 : vector<8x256xf32>
    %11 = arith.select %8, %6, %10 : vector<8x256xi1>, vector<8x256xf32>
    %12 = arith.truncf %11 : vector<8x256xf32> to vector<8x256xbf16>
    %c0_7 = arith.constant 0 : index
    %c0_8 = arith.constant 0 : index
    %13 = vector.load %arg5[%c0_7, %c0_8] : memref<256x128xbf16, #tpu.memory_space<vmem>>, vector<256x128xbf16>
    %cst_9 = arith.constant dense<0.000000e+00> : vector<8x128xf32>
    %14 = tpu.matmul %12, %13, %cst_9 {dimension_numbers = #tpu.dot_dimension_numbers<[1], [0], [0], [1], [0, 0, 1, 1], [], []>} : vector<8x256xbf16>, vector<256x128xbf16>, vector<8x128xf32> -> vector<8x128xf32>
    %c0_10 = arith.constant 0 : index
    %c0_11 = arith.constant 0 : index
    %15 = vector.load %arg6[%c0_10, %c0_11] : memref<1x128xf32, #tpu.memory_space<vmem>>, vector<1x128xf32>
    %16 = vector.broadcast %15 : vector<1x128xf32> to vector<8x128xf32>
    %17 = arith.addf %14, %16 : vector<8x128xf32>
    %cst_12 = arith.constant 0.000000e+00 : f32
    %18 = vector.broadcast %cst_12 : f32 to vector<8x128xf32>
    %19 = arith.cmpf ogt, %17, %18 : vector<8x128xf32>
    %cst_13 = arith.constant 2.500000e-01 : f32
    %20 = vector.broadcast %cst_13 : f32 to vector<8x128xf32>
    %21 = arith.mulf %20, %17 : vector<8x128xf32>
    %22 = arith.select %19, %17, %21 : vector<8x128xi1>, vector<8x128xf32>
    %23 = arith.truncf %22 : vector<8x128xf32> to vector<8x128xbf16>
    %c0_14 = arith.constant 0 : index
    %c0_15 = arith.constant 0 : index
    %24 = vector.load %arg7[%c0_14, %c0_15] : memref<128x128xbf16, #tpu.memory_space<vmem>>, vector<128x128xbf16>
    %cst_16 = arith.constant dense<0.000000e+00> : vector<8x128xf32>
    %25 = tpu.matmul %23, %24, %cst_16 {dimension_numbers = #tpu.dot_dimension_numbers<[1], [0], [0], [1], [0, 0, 1, 1], [], []>} : vector<8x128xbf16>, vector<128x128xbf16>, vector<8x128xf32> -> vector<8x128xf32>
    %c0_17 = arith.constant 0 : index
    %c0_18 = arith.constant 0 : index
    %26 = vector.load %arg8[%c0_17, %c0_18] : memref<1x128xf32, #tpu.memory_space<vmem>>, vector<1x128xf32>
    %27 = vector.broadcast %26 : vector<1x128xf32> to vector<8x128xf32>
    %28 = arith.addf %25, %27 : vector<8x128xf32>
    %cst_19 = arith.constant 0.000000e+00 : f32
    %29 = vector.broadcast %cst_19 : f32 to vector<8x128xf32>
    %30 = arith.cmpf ogt, %28, %29 : vector<8x128xf32>
    %cst_20 = arith.constant 2.500000e-01 : f32
    %31 = vector.broadcast %cst_20 : f32 to vector<8x128xf32>
    %32 = arith.mulf %31, %28 : vector<8x128xf32>
    %33 = arith.select %30, %28, %32 : vector<8x128xi1>, vector<8x128xf32>
    %34 = arith.truncf %33 : vector<8x128xf32> to vector<8x128xbf16>
    %c0_21 = arith.constant 0 : index
    %c0_22 = arith.constant 0 : index
    %35 = vector.load %arg9[%c0_21, %c0_22] : memref<128x128xbf16, #tpu.memory_space<vmem>>, vector<128x128xbf16>
    %cst_23 = arith.constant dense<0.000000e+00> : vector<8x128xf32>
    %36 = tpu.matmul %34, %35, %cst_23 {dimension_numbers = #tpu.dot_dimension_numbers<[1], [0], [0], [1], [0, 0, 1, 1], [], []>} : vector<8x128xbf16>, vector<128x128xbf16>, vector<8x128xf32> -> vector<8x128xf32>
    %c0_24 = arith.constant 0 : index
    %c0_25 = arith.constant 0 : index
    %37 = vector.load %arg10[%c0_24, %c0_25] : memref<1x128xf32, #tpu.memory_space<vmem>>, vector<1x128xf32>
    %38 = vector.broadcast %37 : vector<1x128xf32> to vector<8x128xf32>
    %39 = arith.addf %36, %38 : vector<8x128xf32>
    %c0_26 = arith.constant 0 : index
    %c0_27 = arith.constant 0 : index
    %40 = vector.load %arg2[%c0_26, %c0_27] : memref<8x32xf32, #tpu.memory_space<vmem>>, vector<8x32xf32>
    %41 = arith.truncf %40 : vector<8x32xf32> to vector<8x32xbf16>
    %c0_28 = arith.constant 0 : index
    %c0_29 = arith.constant 0 : index
    %42 = vector.load %arg3[%c0_28, %c0_29] : memref<32x256xbf16, #tpu.memory_space<vmem>>, vector<32x256xbf16>
    %cst_30 = arith.constant dense<0.000000e+00> : vector<8x256xf32>
    %43 = tpu.matmul %41, %42, %cst_30 {dimension_numbers = #tpu.dot_dimension_numbers<[1], [0], [0], [1], [0, 0, 1, 1], [], []>} : vector<8x32xbf16>, vector<32x256xbf16>, vector<8x256xf32> -> vector<8x256xf32>
    %c0_31 = arith.constant 0 : index
    %c0_32 = arith.constant 0 : index
    %44 = vector.load %arg4[%c0_31, %c0_32] : memref<1x256xf32, #tpu.memory_space<vmem>>, vector<1x256xf32>
    %45 = vector.broadcast %44 : vector<1x256xf32> to vector<8x256xf32>
    %46 = arith.addf %43, %45 : vector<8x256xf32>
    %cst_33 = arith.constant 0.000000e+00 : f32
    %47 = vector.broadcast %cst_33 : f32 to vector<8x256xf32>
    %48 = arith.cmpf ogt, %46, %47 : vector<8x256xf32>
    %cst_34 = arith.constant 2.500000e-01 : f32
    %49 = vector.broadcast %cst_34 : f32 to vector<8x256xf32>
    %50 = arith.mulf %49, %46 : vector<8x256xf32>
    %51 = arith.select %48, %46, %50 : vector<8x256xi1>, vector<8x256xf32>
    %52 = arith.truncf %51 : vector<8x256xf32> to vector<8x256xbf16>
    %c0_35 = arith.constant 0 : index
    %c0_36 = arith.constant 0 : index
    %53 = vector.load %arg5[%c0_35, %c0_36] : memref<256x128xbf16, #tpu.memory_space<vmem>>, vector<256x128xbf16>
    %cst_37 = arith.constant dense<0.000000e+00> : vector<8x128xf32>
    %54 = tpu.matmul %52, %53, %cst_37 {dimension_numbers = #tpu.dot_dimension_numbers<[1], [0], [0], [1], [0, 0, 1, 1], [], []>} : vector<8x256xbf16>, vector<256x128xbf16>, vector<8x128xf32> -> vector<8x128xf32>
    %c0_38 = arith.constant 0 : index
    %c0_39 = arith.constant 0 : index
    %55 = vector.load %arg6[%c0_38, %c0_39] : memref<1x128xf32, #tpu.memory_space<vmem>>, vector<1x128xf32>
    %56 = vector.broadcast %55 : vector<1x128xf32> to vector<8x128xf32>
    %57 = arith.addf %54, %56 : vector<8x128xf32>
    %cst_40 = arith.constant 0.000000e+00 : f32
    %58 = vector.broadcast %cst_40 : f32 to vector<8x128xf32>
    %59 = arith.cmpf ogt, %57, %58 : vector<8x128xf32>
    %cst_41 = arith.constant 2.500000e-01 : f32
    %60 = vector.broadcast %cst_41 : f32 to vector<8x128xf32>
    %61 = arith.mulf %60, %57 : vector<8x128xf32>
    %62 = arith.select %59, %57, %61 : vector<8x128xi1>, vector<8x128xf32>
    %63 = arith.truncf %62 : vector<8x128xf32> to vector<8x128xbf16>
    %c0_42 = arith.constant 0 : index
    %c0_43 = arith.constant 0 : index
    %64 = vector.load %arg7[%c0_42, %c0_43] : memref<128x128xbf16, #tpu.memory_space<vmem>>, vector<128x128xbf16>
    %cst_44 = arith.constant dense<0.000000e+00> : vector<8x128xf32>
    %65 = tpu.matmul %63, %64, %cst_44 {dimension_numbers = #tpu.dot_dimension_numbers<[1], [0], [0], [1], [0, 0, 1, 1], [], []>} : vector<8x128xbf16>, vector<128x128xbf16>, vector<8x128xf32> -> vector<8x128xf32>
    %c0_45 = arith.constant 0 : index
    %c0_46 = arith.constant 0 : index
    %66 = vector.load %arg8[%c0_45, %c0_46] : memref<1x128xf32, #tpu.memory_space<vmem>>, vector<1x128xf32>
    %67 = vector.broadcast %66 : vector<1x128xf32> to vector<8x128xf32>
    %68 = arith.addf %65, %67 : vector<8x128xf32>
    %cst_47 = arith.constant 0.000000e+00 : f32
    %69 = vector.broadcast %cst_47 : f32 to vector<8x128xf32>
    %70 = arith.cmpf ogt, %68, %69 : vector<8x128xf32>
    %cst_48 = arith.constant 2.500000e-01 : f32
    %71 = vector.broadcast %cst_48 : f32 to vector<8x128xf32>
    %72 = arith.mulf %71, %68 : vector<8x128xf32>
    %73 = arith.select %70, %68, %72 : vector<8x128xi1>, vector<8x128xf32>
    %74 = arith.truncf %73 : vector<8x128xf32> to vector<8x128xbf16>
    %c0_49 = arith.constant 0 : index
    %c0_50 = arith.constant 0 : index
    %75 = vector.load %arg9[%c0_49, %c0_50] : memref<128x128xbf16, #tpu.memory_space<vmem>>, vector<128x128xbf16>
    %cst_51 = arith.constant dense<0.000000e+00> : vector<8x128xf32>
    %76 = tpu.matmul %74, %75, %cst_51 {dimension_numbers = #tpu.dot_dimension_numbers<[1], [0], [0], [1], [0, 0, 1, 1], [], []>} : vector<8x128xbf16>, vector<128x128xbf16>, vector<8x128xf32> -> vector<8x128xf32>
    %c0_52 = arith.constant 0 : index
    %c0_53 = arith.constant 0 : index
    %77 = vector.load %arg10[%c0_52, %c0_53] : memref<1x128xf32, #tpu.memory_space<vmem>>, vector<1x128xf32>
    %78 = vector.broadcast %77 : vector<1x128xf32> to vector<8x128xf32>
    %79 = arith.addf %76, %78 : vector<8x128xf32>
    %c0_54 = arith.constant 0 : index
    %c0_55 = arith.constant 0 : index
    %80 = vector.load %arg11[%c0_54, %c0_55] : memref<8x128xf32, #tpu.memory_space<vmem>>, vector<8x128xf32>
    tpu.vector_store %arg11[%c0_54, %c0_55], %39 {strides = array<i32>} : memref<8x128xf32, #tpu.memory_space<vmem>>, vector<8x128xf32>,
    %c0_56 = arith.constant 0 : index
    %c0_57 = arith.constant 0 : index
    %81 = vector.load %arg12[%c0_56, %c0_57] : memref<8x128xf32, #tpu.memory_space<vmem>>, vector<8x128xf32>
    tpu.vector_store %arg12[%c0_56, %c0_57], %79 {strides = array<i32>} : memref<8x128xf32, #tpu.memory_space<vmem>>, vector<8x128xf32>,
    %82 = tpu.iota {dimensions = array<i32: 1>} : vector<8x128xi32>
    %c30_i32 = arith.constant 30 : i32
    %83 = vector.broadcast %c30_i32 : i32 to vector<8x128xi32>
    %84 = arith.cmpi slt, %82, %83 : vector<8x128xi32>
    %85 = arith.subf %39, %79 : vector<8x128xf32>
    %cst_58 = arith.constant 9.99999997E-7 : f32
    %86 = vector.broadcast %cst_58 : f32 to vector<8x128xf32>
    %87 = arith.addf %85, %86 : vector<8x128xf32>
    %cst_59 = arith.constant 0.000000e+00 : f32
    %88 = vector.broadcast %cst_59 : f32 to vector<8x128xf32>
    %89 = arith.select %84, %87, %88 : vector<8x128xi1>, vector<8x128xf32>
    %90 = arith.mulf %89, %89 : vector<8x128xf32>
    %cst_60 = arith.constant dense<0.000000e+00> : vector<8xf32>
    %91 = vector.multi_reduction <add>, %90, %cst_60 [1] : vector<8x128xf32> to vector<8xf32>
    %92 = vector.shape_cast %91 : vector<8xf32> to vector<8x1xf32>
    %93 = math.sqrt %92 : vector<8x1xf32>
    %c0_61 = arith.constant 0 : index
    %c0_62 = arith.constant 0 : index
    %94 = vector.load %arg13[%c0_61, %c0_62] : memref<8x1xf32, #tpu.memory_space<vmem>>, vector<8x1xf32>
    tpu.vector_store %arg13[%c0_61, %c0_62], %93 {strides = array<i32>} : memref<8x1xf32, #tpu.memory_space<vmem>>, vector<8x1xf32>,
    return
  }
  func.func @transform_0(%arg0: i32) -> (i32, i32) {
    %c0_i32 = arith.constant 0 : i32
    %c0_i32_0 = arith.constant 0 : i32
    return %arg0, %c0_i32 : i32, i32
  }
  func.func @transform_1(%arg0: i32) -> (i32, i32) {
    %c0_i32 = arith.constant 0 : i32
    %c0_i32_0 = arith.constant 0 : i32
    return %arg0, %c0_i32 : i32, i32
  }
  func.func @transform_2(%arg0: i32) -> (i32, i32) {
    %c0_i32 = arith.constant 0 : i32
    %c0_i32_0 = arith.constant 0 : i32
    %c0_i32_1 = arith.constant 0 : i32
    return %c0_i32, %c0_i32_0 : i32, i32
  }
  func.func @transform_3(%arg0: i32) -> (i32, i32) {
    %c0_i32 = arith.constant 0 : i32
    %c0_i32_0 = arith.constant 0 : i32
    %c0_i32_1 = arith.constant 0 : i32
    return %c0_i32, %c0_i32_0 : i32, i32
  }
  func.func @transform_4(%arg0: i32) -> (i32, i32) {
    %c0_i32 = arith.constant 0 : i32
    %c0_i32_0 = arith.constant 0 : i32
    %c0_i32_1 = arith.constant 0 : i32
    return %c0_i32, %c0_i32_0 : i32, i32
  }
  func.func @transform_5(%arg0: i32) -> (i32, i32) {
    %c0_i32 = arith.constant 0 : i32
    %c0_i32_0 = arith.constant 0 : i32
    %c0_i32_1 = arith.constant 0 : i32
    return %c0_i32, %c0_i32_0 : i32, i32
  }
  func.func @transform_6(%arg0: i32) -> (i32, i32) {
    %c0_i32 = arith.constant 0 : i32
    %c0_i32_0 = arith.constant 0 : i32
    %c0_i32_1 = arith.constant 0 : i32
    return %c0_i32, %c0_i32_0 : i32, i32
  }
  func.func @transform_7(%arg0: i32) -> (i32, i32) {
    %c0_i32 = arith.constant 0 : i32
    %c0_i32_0 = arith.constant 0 : i32
    %c0_i32_1 = arith.constant 0 : i32
    return %c0_i32, %c0_i32_0 : i32, i32
  }
  func.func @transform_8(%arg0: i32) -> (i32, i32) {
    %c0_i32 = arith.constant 0 : i32
    %c0_i32_0 = arith.constant 0 : i32
    %c0_i32_1 = arith.constant 0 : i32
    return %c0_i32, %c0_i32_0 : i32, i32
  }
  func.func @transform_9(%arg0: i32) -> (i32, i32) {
    %c0_i32 = arith.constant 0 : i32
    %c0_i32_0 = arith.constant 0 : i32
    %c0_i32_1 = arith.constant 0 : i32
    return %c0_i32, %c0_i32_0 : i32, i32
  }
  func.func @transform_10(%arg0: i32) -> (i32, i32) {
    %c0_i32 = arith.constant 0 : i32
    %c0_i32_0 = arith.constant 0 : i32
    return %arg0, %c0_i32 : i32, i32
  }
  func.func @transform_11(%arg0: i32) -> (i32, i32) {
    %c0_i32 = arith.constant 0 : i32
    %c0_i32_0 = arith.constant 0 : i32
    return %arg0, %c0_i32 : i32, i32
  }
  func.func @transform_12(%arg0: i32) -> (i32, i32) {
    %c0_i32 = arith.constant 0 : i32
    %c0_i32_0 = arith.constant 0 : i32
    return %arg0, %c0_i32 : i32, i32
  }
}

</mosaic_0001>

<bundles_post_ra>
// kernel: tpu_custom_call.1
= control target key start
LH: loop header
LB: loop body
LE: loop exit
PB: predicated region body
PF: predicated region fallthrough
CT: control target
= control target key end

     0   :  { %18 = vsyncpa [#allocation3], 0  ;;  %s1716_s0 = inlined_call_operand.hbm [shape: f32[8,32], index: 0, kind: input, shape index: {}]   ;;  %s1717_s1 = inlined_call_operand.hbm [shape: f32[8,32], index: 1, kind: input, shape index: {}]   ;;  %s1718_s2 = inlined_call_operand.hbm [shape: bf16[32,256], index: 2, kind: input, shape index: {}]   ;;  %s1719_s3 = inlined_call_operand.vmem [shape: f32[1,256], index: 3, kind: input, shape index: {}]   ;;  %s1720_s4 = inlined_call_operand.hbm [shape: bf16[256,128], index: 4, kind: input, shape index: {}]   ;;  %s1721_s5 = inlined_call_operand.vmem [shape: f32[1,128], index: 5, kind: input, shape index: {}]   ;;  %s1722_s6 = inlined_call_operand.hbm [shape: bf16[128,128], index: 6, kind: input, shape index: {}]   ;;  %s1723_s7 = inlined_call_operand.vmem [shape: f32[1,128], index: 7, kind: input, shape index: {}]   ;;  %s1724_s8 = inlined_call_operand.hbm [shape: bf16[128,128], index: 8, kind: input, shape index: {}]   ;;  %s1725_s9 = inlined_call_operand.vmem [shape: f32[1,128], index: 9, kind: input, shape index: {}]   ;;  %s1726_s10 = inlined_call_operand.hbm [shape: f32[8,128], index: 10, kind: output, shape index: {0}]   ;;  %s1727_s11 = inlined_call_operand.hbm [shape: f32[8,128], index: 11, kind: output, shape index: {1}]   ;;  %s1728_s12 = inlined_call_operand.vmem [shape: f32[8,1], index: 12, kind: output, shape index: {2}]  }
   0x1   :  { %19 = vsyncpa [#allocation6], 0 }
   0x2   :  { %20 = vsyncpa [#allocation9], 0 }
   0x3   :  { %21 = vsyncpa [#allocation12], 0 }
   0x4   :  { %22 = vsyncpa [#allocation4], 0 }
   0x5   :  { %23 = vsyncpa [#allocation15], 0  ;;  %s1297_s21 = smov [#allocation5]   ;;  %s1298_s23 = smov [#allocation8]  }
   0x6   :  { %s40_s22 = sshll.u32 %s1297_s21, 4  ;;  %s63_s24 = sshll.u32 %s1298_s23, 4  ;;  %s41_s22 = int_to_ptr.vmem [resolvable:$true] %s40_s22  ;;  %s1377_s24 = int_to_ptr.vmem [resolvable:$true] %s63_s24 }
   0x7   :  { %s1109_s27 = scalar_lea.hbm %s1717_s1, 128 }
   0x8   :  { %p1110_p0 = scmp.ne.s32.totalorder %s1717_s1, %s1109_s27  ;;  %p1113_p1 = scmp.lt.u32.totalorder %s1109_s27, %s1717_s1 }
   0xa   :  { %p1115_p2 = pnand %p1113_p1, %p1110_p0 }
   0xc   :  { %1118 = shalt.err (!%p1115_p2)
}
   0xd   :  { %s1119_s14 = scalar_lea.vmem %s41_s22, 128  ;;  %p1124_p4 = scmp.lt.s32.totalorder %s41_s22, %s41_s22 }
   0xe   :  { %p1120_p3 = scmp.ne.s32.totalorder %s41_s22, %s1119_s14  ;;  %p1125_p5 = scmp.lt.s32.totalorder %s1119_s14, %s1119_s14 }
  0x10   :  { %p1126_p6 = por %p1125_p5, %p1124_p4 }
  0x12   :  { %p1127_p7 = pnand %p1126_p6, %p1120_p3 }
  0x14   :  { %1130 = shalt.err (!%p1127_p7)
}
  0x15   :  { %43 = dma.hbm_to_vmem [thread:$0]  %s1717_s1, 128, %s41_s22, [#allocation6]  }
  0x16   :  { %s1131_s19 = scalar_lea.hbm %s1720_s4, 2048 }
  0x17   :  { %p1132_p8 = scmp.ne.s32.totalorder %s1720_s4, %s1131_s19  ;;  %p1135_p9 = scmp.lt.u32.totalorder %s1131_s19, %s1720_s4 }
  0x19   :  { %p1137_p10 = pnand %p1135_p9, %p1132_p8 }
  0x1b   :  { %1140 = shalt.err (!%p1137_p10)
}
  0x1c   :  { %s1141_s26 = scalar_lea.vmem %s1377_s24, 2048  ;;  %p1146_p12 = scmp.lt.s32.totalorder %s1377_s24, %s1377_s24 }
  0x1d   :  { %p1142_p11 = scmp.ne.s32.totalorder %s1377_s24, %s1141_s26  ;;  %p1147_p13 = scmp.lt.s32.totalorder %s1141_s26, %s1141_s26 }
  0x1f   :  { %p1148_p0 = por %p1147_p13, %p1146_p12 }
  0x21   :  { %p1149_p1 = pnand %p1148_p0, %p1142_p11 }
  0x23   :  { %1152 = shalt.err (!%p1149_p1)
}
  0x24   :  { %s1299_s1 = smov 64   ;;  %s1300_s22 = smov 4  }
  0x25   :  { %69 = dma.hbm_to_vmem [thread:$0]  %s1720_s4, 2048, %s1377_s24, [#allocation9], %s1299_s1, %s1299_s1, %s1300_s22  }
  0x26   :  { %s1301_s29 = smov [#allocation2]   ;;  %s1302_s13 = smov [#allocation7]  }
  0x27   :  { %s30_s30 = sshll.u32 %s1301_s29, 4  ;;  %s49_s14 = sshll.u32 %s1302_s13, 4  ;;  %s31_s30 = int_to_ptr.vmem [resolvable:$true] %s30_s30  ;;  %s1411_s14 = int_to_ptr.vmem [resolvable:$true] %s49_s14 }
  0x28   :  { %s1153_s17 = scalar_lea.hbm %s1716_s0, 128 }
  0x29   :  { %p1154_p2 = scmp.ne.s32.totalorder %s1716_s0, %s1153_s17  ;;  %p1157_p3 = scmp.lt.u32.totalorder %s1153_s17, %s1716_s0 }
  0x2b   :  { %p1159_p4 = pnand %p1157_p3, %p1154_p2 }
  0x2d   :  { %1162 = shalt.err (!%p1159_p4)
}
  0x2e   :  { %s1163_s4 = scalar_lea.vmem %s31_s30, 128  ;;  %p1168_p6 = scmp.lt.s32.totalorder %s31_s30, %s31_s30 }
  0x2f   :  { %p1164_p5 = scmp.ne.s32.totalorder %s31_s30, %s1163_s4  ;;  %p1169_p7 = scmp.lt.s32.totalorder %s1163_s4, %s1163_s4 }
  0x31   :  { %p1170_p8 = por %p1169_p7, %p1168_p6 }
  0x33   :  { %p1171_p9 = pnand %p1170_p8, %p1164_p5 }
  0x35   :  { %1174 = shalt.err (!%p1171_p9)
}
  0x36   :  { %33 = dma.hbm_to_vmem [thread:$0]  %s1716_s0, 128, %s31_s30, [#allocation3]  }
  0x37   :  { %s1175_s27 = scalar_lea.hbm %s1718_s2, 512 }
  0x38   :  { %p1176_p10 = scmp.ne.s32.totalorder %s1718_s2, %s1175_s27  ;;  %p1179_p11 = scmp.lt.u32.totalorder %s1175_s27, %s1718_s2 }
  0x3a   :  { %p1181_p12 = pnand %p1179_p11, %p1176_p10 }
  0x3c   :  { %1184 = shalt.err (!%p1181_p12)
}
  0x3d   :  { %s1185_s16 = scalar_lea.vmem %s1411_s14, 512  ;;  %p1190_p0 = scmp.lt.s32.totalorder %s1411_s14, %s1411_s14 }
  0x3e   :  { %p1186_p13 = scmp.ne.s32.totalorder %s1411_s14, %s1185_s16  ;;  %p1191_p1 = scmp.lt.s32.totalorder %s1185_s16, %s1185_s16 }
  0x40   :  { %p1192_p2 = por %p1191_p1, %p1190_p0 }
  0x42   :  { %p1193_p3 = pnand %p1192_p2, %p1186_p13 }
  0x44   :  { %1196 = shalt.err (!%p1193_p3)
}
  0x45   :  { %s1303_s0 = smov 128   ;;  %s1304_s30 = smov 8  }
  0x46   :  { %55 = dma.hbm_to_vmem [thread:$0]  %s1718_s2, 512, %s1411_s14, [#allocation6], %s1303_s0, %s1303_s0, %s1304_s30  }
  0x47   :  { %s1305_s19 = smov [#allocation10]   ;;  %s1306_s21 = smov [#allocation11]  }
  0x48   :  { %s77_s20 = sshll.u32 %s1305_s19, 4  ;;  %s91_s4 = sshll.u32 %s1306_s21, 4  ;;  %s78_s20 = int_to_ptr.vmem [resolvable:$true] %s77_s20  ;;  %s1442_s4 = int_to_ptr.vmem [resolvable:$true] %s91_s4 }
  0x49   :  { %s1197_s25 = scalar_lea.hbm %s1722_s6, 1024 }
  0x4a   :  { %p1198_p4 = scmp.ne.s32.totalorder %s1722_s6, %s1197_s25  ;;  %p1201_p5 = scmp.lt.u32.totalorder %s1197_s25, %s1722_s6 }
  0x4c   :  { %p1203_p6 = pnand %p1201_p5, %p1198_p4 }
  0x4e   :  { %1206 = shalt.err (!%p1203_p6)
}
  0x4f   :  { %s1207_s2 = scalar_lea.vmem %s78_s20, 1024  ;;  %p1212_p8 = scmp.lt.s32.totalorder %s78_s20, %s78_s20 }
  0x50   :  { %p1208_p7 = scmp.ne.s32.totalorder %s78_s20, %s1207_s2  ;;  %p1213_p9 = scmp.lt.s32.totalorder %s1207_s2, %s1207_s2 }
  0x52   :  { %p1214_p10 = por %p1213_p9, %p1212_p8 }
  0x54   :  { %p1215_p11 = pnand %p1214_p10, %p1208_p7 }
  0x56   :  { %1218 = shalt.err (!%p1215_p11)
}
  0x57   :  { %83 = dma.hbm_to_vmem [thread:$0]  %s1722_s6, 1024, %s78_s20, [#allocation9], %s1299_s1, %s1299_s1, %s1300_s22  }
  0x58   :  { %s1219_s0 = scalar_lea.hbm %s1724_s8, 1024 }
  0x59   :  { %p1220_p12 = scmp.ne.s32.totalorder %s1724_s8, %s1219_s0  ;;  %p1223_p13 = scmp.lt.u32.totalorder %s1219_s0, %s1724_s8 }
  0x5b   :  { %p1225_p0 = pnand %p1223_p13, %p1220_p12 }
  0x5d   :  { %1228 = shalt.err (!%p1225_p0)
}
  0x5e   :  { %s1229_s21 = scalar_lea.vmem %s1442_s4, 1024  ;;  %p1234_p2 = scmp.lt.s32.totalorder %s1442_s4, %s1442_s4 }
  0x5f   :  { %p1230_p1 = scmp.ne.s32.totalorder %s1442_s4, %s1229_s21  ;;  %p1235_p3 = scmp.lt.s32.totalorder %s1229_s21, %s1229_s21 }
  0x61   :  { %p1236_p4 = por %p1235_p3, %p1234_p2 }
  0x63   :  { %p1237_p5 = pnand %p1236_p4, %p1230_p1 }
  0x65   :  { %1240 = shalt.err (!%p1237_p5)
}
  0x66   :  { %97 = dma.hbm_to_vmem [thread:$0]  %s1724_s8, 1024, %s1442_s4, [#allocation12], %s1299_s1, %s1299_s1, %s1300_s22  }
  0x67   :  { %1285 = dma.done.wait [#allocation3], 128  }
  0x68   :  { %1286 = vsyncadd [#allocation3], 4294967168 }
  0x69   :  { %1287 = dma.done.wait [#allocation6], 640  }
  0x6a   :  { %1288 = vsyncadd [#allocation6], 4294966656 }
  0x6b   :  { %1289 = dma.done.wait [#allocation9], 3072  }
  0x6c   :  { %1290 = vsyncadd [#allocation9], 4294964224 }
  0x6d   :  { %1291 = dma.done.wait [#allocation12], 1024  }
  0x6e   :  { %1292 = vsyncadd [#allocation12], 4294966272  ;;  %v1307_v0 = vmov 0   ;;  %v1480_v1 = vld [vmem:[#allocation7 + $0x4] ss:$8 sps:$4 sm:$0xff]   ;;  %v119_v5 = vld [vmem:[#allocation2] sm:$0xff]  ;;  %v127_v30 = vlaneseq }
  0x6f   :  { %193 = vmatprep.mubr.bf16.mxu1 %v1307_v0  ;;  %v1482_v2 = vld [vmem:[#allocation7] ss:$8 sps:$4 sm:$0xff]   ;;  %161 = vmatprep.subr.bf16.mxu1 %v1480_v1  ;;  %v1485_v3 = vld [vmem:[#allocation7 + $0x14] ss:$8 sps:$4 sm:$0xff]   ;;  %v1487_v4 = vld [vmem:[#allocation7 + $0x10] ss:$8 sps:$4 sm:$0xff]   ;;  %v120_v7 = vpack.c.bf16 %v119_v5, %v119_v5 }
  0x70   :  { %162 = vmatpush1.bf16.msra.mxu1 %v1482_v2  ;;  %v1491_v6 = vld [vmem:[#allocation8 + $0x40] sm:$0xff]   ;;  %vm157_vm0 = vcmask 261120   ;;  %v1497_v9 = vld [vmem:[#allocation8 + $0x48] sm:$0xff]   ;;  %v1504_v11 = vld [vmem:[#allocation8 + $0x50] sm:$0xff]   ;;  %v1308_v24 = vmov 0.0   ;;  %v128_v31 = vshrl.u32 %v127_v30, 7 }
  0x71   :  { %163 = vmatprep.subr.bf16.mxu1 %v1485_v3  ;;  %v1494_v8 = vld [vmem:[#allocation8] sm:$0xff]   ;;  %v1501_v10 = vld [vmem:[#allocation8 + $0x8] sm:$0xff]   ;;  %v1506_v12 = vld [vmem:[#allocation8 + $0x10] sm:$0xff]   ;;  %974 = vmatprep.subr.bf16.mxu0 %v1308_v24  ;;  %vm1309_vm3 = vmmov 0   ;;  %s1311_s25 = smov [#allocation14]  }
  0x72   :  { %v1509_v13 = vld [vmem:[#allocation8 + $0x58] sm:$0xff]   ;;  %v1514_v15 = vld [vmem:[#allocation8 + $0x60] sm:$0xff]   ;;  %v1520_v17 = vld [vmem:[#allocation8 + $0x68] sm:$0xff]   ;;  %v129_v32 = vsub.s32 0, %v128_v31  ;;  %v133_v34 = vsub.s32 1, %v128_v31  ;;  %990 = vmatprep.mubr.msk.bf16.mxu0 %vm1309_vm3, %v1308_v24  ;;  %s833_s26 = sshll.u32 %s1311_s25, 4  ;;  %s834_s26 = int_to_ptr.vmem [resolvable:$true] %s833_s26 }
  0x73   :  { %v1512_v14 = vld [vmem:[#allocation8 + $0x18] sm:$0xff]   ;;  %v1518_v16 = vld [vmem:[#allocation8 + $0x20] sm:$0xff]   ;;  %v1524_v18 = vld [vmem:[#allocation8 + $0x28] sm:$0xff]  }
  0x74   :  { %164 = vmatpush1.bf16.msra.mxu1 %v1487_v4  ;;  %v1529_v19 = vld [vmem:[#allocation8 + $0x70] sm:$0xff]   ;;  %v1535_v21 = vld [vmem:[#allocation8 + $0x78] sm:$0xff]   ;;  %v1541_v23 = vld [vmem:[#allocation10] sm:$0xff]  }
  0x75   :  { %894 = vmatprep.subr.bf16.mxu1 %v1491_v6  ;;  %v1531_v20 = vld [vmem:[#allocation8 + $0x30] sm:$0xff]   ;;  %v1537_v22 = vld [vmem:[#allocation8 + $0x38] sm:$0xff]   ;;  %975 = vmatpush3.bf16.msra.mxu0 %v1541_v23  ;;  %v1546_v25 = vld [vmem:[#allocation10 + $0x8] sm:$0xff]  }
  0x76   :  { %976 = vmatprep.subr.bf16.mxu0 %v1308_v24  ;;  %v1550_v26 = vld [vmem:[#allocation10 + $0x10] sm:$0xff]   ;;  %v1554_v27 = vld [vmem:[#allocation10 + $0x18] sm:$0xff]   ;;  %v1558_v28 = vld [vmem:[#allocation10 + $0x20] sm:$0xff]  }
  0x77   :  { %857 = vmatmul.mubr.msk.bf16.vlgmr.msra.gmra.mrb[0].mxu1 %vm157_vm0, %v120_v7  ;;  %v1562_v29 = vld [vmem:[#allocation10 + $0x28] sm:$0xff]   ;;  %v125_v33 = vld [vmem:[%s1719_s3] sm:$0x3]  ;;  %v1581_v50 = vld [vmem:[#allocation10 + $0x38] sm:$0xff]  }
  0x78   :  { %895 = vmatpush3.bf16.msra.mxu1 %v1494_v8  ;;  %v1571_v35 = vrot.slane %v125_v33, %v129_v32  ;;  %v1573_v36 = vrot.slane %v125_v33, %v133_v34  ;;  %v1577_v49 = vld [vmem:[#allocation10 + $0x30] sm:$0xff]   ;;  %v1589_v51 = vld [vmem:[#allocation11] sm:$0xff]   ;;  %v1592_v52 = vld [vmem:[#allocation11 + $0x8] sm:$0xff]  }
  0x79   :  { %896 = vmatprep.subr.bf16.mxu1 %v1497_v9  ;;  %977 = vmatpush3.bf16.msra.mxu0 %v1546_v25  ;;  %v1596_v53 = vld [vmem:[#allocation11 + $0x10] sm:$0xff]   ;;  %v1600_v54 = vld [vmem:[#allocation11 + $0x18] sm:$0xff]   ;;  %v1604_v55 = vld [vmem:[#allocation11 + $0x20] sm:$0xff]  }
  0x7a   :  { %978 = vmatprep.subr.bf16.mxu0 %v1308_v24  ;;  %v1608_v56 = vld [vmem:[#allocation11 + $0x28] sm:$0xff]   ;;  %v1616_v58 = vld [vmem:[%s1721_s5] ss:$0 sm:$0xff]  ;;  %v615_v31 = vld [vmem:[#allocation5] sm:$0xff] }
  0x7b   :  { %v616_v32 = vpack.c.bf16 %v615_v31, %v615_v31 }
  0x7c   :  { %897 = vmatpush3.bf16.msra.mxu1 %v1501_v10 }
  0x7d   :  { %898 = vmatprep.subr.bf16.mxu1 %v1504_v11  ;;  %979 = vmatpush3.bf16.msra.mxu0 %v1550_v26 }
  0x7e   :  { %980 = vmatprep.subr.bf16.mxu0 %v1308_v24 }
  0x80   :  { %899 = vmatpush3.bf16.msra.mxu1 %v1506_v12 }
  0x81   :  { %900 = vmatprep.subr.bf16.mxu1 %v1509_v13  ;;  %981 = vmatpush3.bf16.msra.mxu0 %v1554_v27 }
  0x82   :  { %982 = vmatprep.subr.bf16.mxu0 %v1308_v24 }
  0x84   :  { %901 = vmatpush3.bf16.msra.mxu1 %v1512_v14 }
  0x85   :  { %902 = vmatprep.subr.bf16.mxu1 %v1514_v15  ;;  %983 = vmatpush3.bf16.msra.mxu0 %v1558_v28 }
  0x86   :  { %984 = vmatprep.subr.bf16.mxu0 %v1308_v24 }
  0x88   :  { %903 = vmatpush3.bf16.msra.mxu1 %v1518_v16 }
  0x89   :  { %904 = vmatprep.subr.bf16.mxu1 %v1520_v17  ;;  %985 = vmatpush3.bf16.msra.mxu0 %v1562_v29 }
  0x8a   :  { %986 = vmatprep.subr.bf16.mxu0 %v1308_v24 }
  0x8c   :  { %905 = vmatpush3.bf16.msra.mxu1 %v1524_v18 }
  0x8d   :  { %906 = vmatprep.subr.bf16.mxu1 %v1529_v19  ;;  %987 = vmatpush3.bf16.msra.mxu0 %v1577_v49 }
  0x8e   :  { %988 = vmatprep.subr.bf16.mxu0 %v1308_v24 }
  0x90   :  { %907 = vmatpush3.bf16.msra.mxu1 %v1531_v20 }
  0x91   :  { %908 = vmatprep.subr.bf16.mxu1 %v1535_v21  ;;  %989 = vmatpush3.bf16.msra.mxu0 %v1581_v50 }
  0x92   :  { %620 = vmatprep.subr.bf16.mxu0 %v1480_v1 }
  0x94   :  { %909 = vmatpush3.bf16.msra.mxu1 %v1537_v22 }
  0x95   :  { %994 = vmatprep.subr.bf16.mxu1 %v1308_v24 }
 0x14a   :  { %v195_v37 = vpop.f32.mrb[0].mxu1 }
 0x14b   :  { %v196_v38 = vadd.f32 %v195_v37, %v1571_v35  ;;  %v197_v39 = vpop.f32.mrb[1].mxu1 }
 0x14c   :  { %v198_v40 = vadd.f32 %v197_v39, %v1573_v36  ;;  %v199_v41 = vpop.f32.mrb[2].mxu1 }
 0x14d   :  { %vm202_vm1 = vcmp.gt.f32.partialorder %v196_v38, 0.0  ;;  %v204_v42 = vmul.f32 0.25, %v196_v38  ;;  %v200_v43 = vpop.f32.mrb[3].mxu1 }
 0x14e   :  { %vm203_vm2 = vcmp.gt.f32.partialorder %v198_v40, 0.0  ;;  %v205_v44 = vmul.f32 0.25, %v198_v40 }
 0x14f   :  { %v206_v45 = vsel %vm202_vm1, %v196_v38, %v204_v42 }
 0x150   :  { %v207_v46 = vsel %vm203_vm2, %v198_v40, %v205_v44  ;;  %v208_v48 = vpack.c.bf16 %v206_v45, %v206_v45 }
 0x151   :  { %v209_v47 = vpack.c.bf16 %v207_v46, %v207_v46 }
 0x153   :  { %377 = vmatprep.mubr.bf16.mxu1 %v209_v47 }
 0x154   :  { %378 = vmatmul.mubr.bf16.vlgmr.msra.gmra.mrb[4].mxu1 %v208_v48 }
 0x155   :  { %1010 = vmatprep.mubr.msk.bf16.mxu1 %vm1309_vm3, %v1308_v24  ;;  %995 = vmatpush3.bf16.msra.mxu1 %v1589_v51 }
 0x156   :  { %996 = vmatprep.subr.bf16.mxu1 %v1308_v24 }
 0x159   :  { %997 = vmatpush3.bf16.msra.mxu1 %v1592_v52 }
 0x15a   :  { %998 = vmatprep.subr.bf16.mxu1 %v1308_v24 }
 0x15d   :  { %999 = vmatpush3.bf16.msra.mxu1 %v1596_v53 }
 0x15e   :  { %1000 = vmatprep.subr.bf16.mxu1 %v1308_v24 }
 0x161   :  { %1001 = vmatpush3.bf16.msra.mxu1 %v1600_v54 }
 0x162   :  { %1002 = vmatprep.subr.bf16.mxu1 %v1308_v24 }
 0x165   :  { %1003 = vmatpush3.bf16.msra.mxu1 %v1604_v55 }
 0x166   :  { %1004 = vmatprep.subr.bf16.mxu1 %v1308_v24 }
 0x169   :  { %1005 = vmatpush3.bf16.msra.mxu1 %v1608_v56 }
 0x16a   :  { %1006 = vmatprep.subr.bf16.mxu1 %v1308_v24 }
 0x227   :  { %v910_v57 = vpop.f32.mrb[4].mxu1 }
 0x228   :  { %v911_v59 = vpop.f32.mrb[5].mxu1 }
 0x229   :  { %v912_v60 = vadd.f32 %v911_v59, %v910_v57  ;;  %v913_v61 = vpop.f32.mrb[6].mxu1 }
 0x22a   :  { %v914_v62 = vpop.f32.mrb[7].mxu1 }
 0x22b   :  { %v380_v63 = vadd.f32 %v912_v60, %v1616_v58 }
 0x22d   :  { %v386_v1 = vmul.f32 0.25, %v380_v63  ;;  %vm385_vm4 = vcmp.gt.f32.partialorder %v380_v63, 0.0 }
 0x22f   :  { %v387_v5 = vsel %vm385_vm4, %v380_v63, %v386_v1 }
 0x230   :  { %v388_v7 = vpack.c.bf16 %v387_v5, %v387_v5 }
 0x232   :  { %991 = vmatmul.mubr.bf16.vlgmr.msra.gmra.mrb[0].mxu0 %v388_v7 }
 0x233   :  { %621 = vmatpush1.bf16.msra.mxu0 %v1482_v2  ;;  %652 = vmatprep.mubr.bf16.mxu0 %v1307_v0  ;;  %v1105_v0 = vld [vmem:[#allocation11 + $0x30] sm:$0xff]   ;;  %v1106_v2 = vld [vmem:[#allocation11 + $0x38] sm:$0xff]  }
 0x234   :  { %622 = vmatprep.subr.bf16.mxu0 %v1485_v3  ;;  %1007 = vmatpush3.bf16.msra.mxu1 %v1105_v0  ;;  %v1646_v3 = vld [vmem:[%s1723_s7] ss:$0 sm:$0xff] }
 0x235   :  { %1008 = vmatprep.subr.bf16.mxu1 %v1308_v24 }
 0x237   :  { %623 = vmatpush1.bf16.msra.mxu0 %v1487_v4 }
 0x238   :  { %934 = vmatprep.subr.bf16.mxu0 %v1491_v6  ;;  %1009 = vmatpush3.bf16.msra.mxu1 %v1106_v2 }
 0x239   :  { %1014 = vmatprep.subr.bf16.mxu1 %v1308_v24 }
 0x23a   :  { %893 = vmatmul.mubr.msk.bf16.vlgmr.msra.gmra.mrb[4].mxu0 %vm157_vm0, %v616_v32 }
 0x23b   :  { %935 = vmatpush3.bf16.msra.mxu0 %v1494_v8 }
 0x23c   :  { %936 = vmatprep.subr.bf16.mxu0 %v1497_v9 }
 0x23f   :  { %937 = vmatpush3.bf16.msra.mxu0 %v1501_v10 }
 0x240   :  { %938 = vmatprep.subr.bf16.mxu0 %v1504_v11 }
 0x243   :  { %939 = vmatpush3.bf16.msra.mxu0 %v1506_v12 }
 0x244   :  { %940 = vmatprep.subr.bf16.mxu0 %v1509_v13 }
 0x247   :  { %941 = vmatpush3.bf16.msra.mxu0 %v1512_v14 }
 0x248   :  { %942 = vmatprep.subr.bf16.mxu0 %v1514_v15 }
 0x24b   :  { %943 = vmatpush3.bf16.msra.mxu0 %v1518_v16 }
 0x24c   :  { %944 = vmatprep.subr.bf16.mxu0 %v1520_v17 }
 0x24f   :  { %945 = vmatpush3.bf16.msra.mxu0 %v1524_v18 }
 0x250   :  { %946 = vmatprep.subr.bf16.mxu0 %v1529_v19 }
 0x253   :  { %947 = vmatpush3.bf16.msra.mxu0 %v1531_v20 }
 0x254   :  { %948 = vmatprep.subr.bf16.mxu0 %v1535_v21 }
 0x257   :  { %949 = vmatpush3.bf16.msra.mxu0 %v1537_v22 }
 0x258   :  { %1034 = vmatprep.subr.bf16.mxu0 %v1308_v24 }
 0x305   :  { %v494_v4 = vpop.f32.mrb[0].mxu0 }
 0x306   :  { %v495_v6 = vadd.f32 %v1646_v3, %v494_v4  ;;  %v992_v8 = vpop.f32.mrb[1].mxu0 }
 0x307   :  { %v497_v9 = vpop.f32.mrb[2].mxu0 }
 0x308   :  { %vm500_vm5 = vcmp.gt.f32.partialorder %v495_v6, 0.0  ;;  %v501_v10 = vmul.f32 0.25, %v495_v6  ;;  %v993_v11 = vpop.f32.mrb[3].mxu0 }
 0x30a   :  { %v502_v12 = vsel %vm500_vm5, %v495_v6, %v501_v10 }
 0x30b   :  { %v503_v13 = vpack.c.bf16 %v502_v12, %v502_v12 }
 0x30d   :  { %1011 = vmatmul.mubr.bf16.vlgmr.msra.gmra.mrb[8].mxu1 %v503_v13  ;;  %v654_v14 = vpop.f32.mrb[4].mxu0 }
 0x30e   :  { %v655_v15 = vadd.f32 %v654_v14, %v1571_v35  ;;  %v656_v16 = vpop.f32.mrb[5].mxu0  ;;  %1015 = vmatpush3.bf16.msra.mxu1 %v1541_v23  ;;  %1030 = vmatprep.mubr.msk.bf16.mxu1 %vm1309_vm3, %v1308_v24 }
 0x30f   :  { %v657_v17 = vadd.f32 %v656_v16, %v1573_v36  ;;  %v658_v18 = vpop.f32.mrb[6].mxu0  ;;  %1016 = vmatprep.subr.bf16.mxu1 %v1308_v24 }
 0x310   :  { %vm661_vm6 = vcmp.gt.f32.partialorder %v655_v15, 0.0  ;;  %v663_v19 = vmul.f32 0.25, %v655_v15  ;;  %v659_v20 = vpop.f32.mrb[7].mxu0 }
 0x311   :  { %vm662_vm7 = vcmp.gt.f32.partialorder %v657_v17, 0.0  ;;  %v664_v21 = vmul.f32 0.25, %v657_v17 }
 0x312   :  { %v665_v22 = vsel %vm661_vm6, %v655_v15, %v663_v19  ;;  %1017 = vmatpush3.bf16.msra.mxu1 %v1546_v25  ;;  %v884_v25 = vld [vmem:[%s1725_s9] ss:$0 sm:$0xff]  ;;  %s1310_s9 = smov [#allocation13]  }
 0x313   :  { %v666_v33 = vsel %vm662_vm7, %v657_v17, %v664_v21  ;;  %1018 = vmatprep.subr.bf16.mxu1 %v1308_v24  ;;  %v667_v34 = vpack.c.bf16 %v665_v22, %v665_v22  ;;  %s823_s23 = sshll.u32 %s1310_s9, 4  ;;  %s824_s23 = int_to_ptr.vmem [resolvable:$true] %s823_s23 }
 0x314   :  { %v668_v23 = vpack.c.bf16 %v666_v33, %v666_v33  ;;  %s1241_s27 = scalar_lea.vmem %s824_s23, 128  ;;  %p1246_p7 = scmp.lt.s32.totalorder %s824_s23, %s824_s23 }
 0x315   :  { %p1242_p6 = scmp.ne.s32.totalorder %s824_s23, %s1241_s27  ;;  %p1247_p8 = scmp.lt.s32.totalorder %s1241_s27, %s1241_s27 }
 0x316   :  { %701 = vmatprep.mubr.bf16.mxu0 %v668_v23  ;;  %1019 = vmatpush3.bf16.msra.mxu1 %v1550_v26 }
 0x317   :  { %702 = vmatmul.mubr.bf16.vlgmr.msra.gmra.mrb[8].mxu0 %v667_v34  ;;  %1020 = vmatprep.subr.bf16.mxu1 %v1308_v24  ;;  %p1248_p9 = por %p1247_p8, %p1246_p7 }
 0x318   :  { %1035 = vmatpush3.bf16.msra.mxu0 %v1589_v51  ;;  %1050 = vmatprep.mubr.msk.bf16.mxu0 %vm1309_vm3, %v1308_v24 }
 0x319   :  { %1036 = vmatprep.subr.bf16.mxu0 %v1308_v24  ;;  %p1249_p10 = pnand %p1248_p9, %p1242_p6 }
 0x31a   :  { %1021 = vmatpush3.bf16.msra.mxu1 %v1554_v27 }
 0x31b   :  { %1022 = vmatprep.subr.bf16.mxu1 %v1308_v24 }
 0x31c   :  { %1037 = vmatpush3.bf16.msra.mxu0 %v1592_v52 }
 0x31d   :  { %1038 = vmatprep.subr.bf16.mxu0 %v1308_v24 }
 0x31e   :  { %1023 = vmatpush3.bf16.msra.mxu1 %v1558_v28 }
 0x31f   :  { %1024 = vmatprep.subr.bf16.mxu1 %v1308_v24 }
 0x320   :  { %1039 = vmatpush3.bf16.msra.mxu0 %v1596_v53  ;;  %v800_v53 = vand.u32 127, %v127_v30 }
 0x321   :  { %1040 = vmatprep.subr.bf16.mxu0 %v1308_v24 }
 0x322   :  { %1025 = vmatpush3.bf16.msra.mxu1 %v1562_v29  ;;  %vm801_vm10 = vcmp.lt.s32.totalorder %v800_v53, 30 }
 0x323   :  { %1026 = vmatprep.subr.bf16.mxu1 %v1308_v24 }
 0x324   :  { %1041 = vmatpush3.bf16.msra.mxu0 %v1600_v54 }
 0x325   :  { %1042 = vmatprep.subr.bf16.mxu0 %v1308_v24 }
 0x326   :  { %1027 = vmatpush3.bf16.msra.mxu1 %v1577_v49 }
 0x327   :  { %1028 = vmatprep.subr.bf16.mxu1 %v1308_v24 }
 0x328   :  { %1043 = vmatpush3.bf16.msra.mxu0 %v1604_v55 }
 0x329   :  { %1044 = vmatprep.subr.bf16.mxu0 %v1308_v24 }
 0x32a   :  { %1029 = vmatpush3.bf16.msra.mxu1 %v1581_v50 }
 0x32c   :  { %1045 = vmatpush3.bf16.msra.mxu0 %v1608_v56 }
 0x32d   :  { %1046 = vmatprep.subr.bf16.mxu0 %v1308_v24 }
 0x330   :  { %1047 = vmatpush3.bf16.msra.mxu0 %v1105_v0 }
 0x331   :  { %1048 = vmatprep.subr.bf16.mxu0 %v1308_v24 }
 0x334   :  { %1049 = vmatpush3.bf16.msra.mxu0 %v1106_v2 }
 0x3e0   :  { %v609_v26 = vpop.f32.mrb[8].mxu1 }
 0x3e1   :  { %v610_v27 = vadd.f32 %v884_v25, %v609_v26  ;;  %v1012_v28 = vpop.f32.mrb[9].mxu1 }
 0x3e2   :  { %v612_v29 = vpop.f32.mrb[10].mxu1 }
 0x3e3   :  { %797 = vst [vmem:[#allocation13] sm:$0xff] %v610_v27  ;;  %v1013_v35 = vpop.f32.mrb[11].mxu1 }
 0x3ea   :  { %v950_v36 = vpop.f32.mrb[8].mxu0 }
 0x3eb   :  { %v951_v37 = vpop.f32.mrb[9].mxu0 }
 0x3ec   :  { %v952_v38 = vadd.f32 %v951_v37, %v950_v36  ;;  %v953_v39 = vpop.f32.mrb[10].mxu0 }
 0x3ed   :  { %v954_v40 = vpop.f32.mrb[11].mxu0 }
 0x3ee   :  { %v704_v41 = vadd.f32 %v952_v38, %v1616_v58 }
 0x3f0   :  { %vm709_vm8 = vcmp.gt.f32.partialorder %v704_v41, 0.0  ;;  %v710_v24 = vmul.f32 0.25, %v704_v41 }
 0x3f2   :  { %v711_v42 = vsel %vm709_vm8, %v704_v41, %v710_v24 }
 0x3f3   :  { %v712_v43 = vpack.c.bf16 %v711_v42, %v711_v42 }
 0x3f5   :  { %1031 = vmatmul.mubr.bf16.vlgmr.msra.gmra.mrb[12].mxu1 %v712_v43 }
 0x4c8   :  { %v747_v44 = vpop.f32.mrb[12].mxu1 }
 0x4c9   :  { %v748_v45 = vadd.f32 %v1646_v3, %v747_v44  ;;  %v1032_v46 = vpop.f32.mrb[13].mxu1 }
 0x4ca   :  { %v750_v47 = vpop.f32.mrb[14].mxu1 }
 0x4cb   :  { %vm753_vm9 = vcmp.gt.f32.partialorder %v748_v45, 0.0  ;;  %v754_v48 = vmul.f32 0.25, %v748_v45  ;;  %v1033_v49 = vpop.f32.mrb[15].mxu1 }
 0x4cd   :  { %v755_v50 = vsel %vm753_vm9, %v748_v45, %v754_v48 }
 0x4ce   :  { %v756_v51 = vpack.c.bf16 %v755_v50, %v755_v50 }
 0x4d0   :  { %1051 = vmatmul.mubr.bf16.vlgmr.msra.gmra.mrb[12].mxu0 %v756_v51 }
 0x5a3   :  { %v791_v52 = vpop.f32.mrb[12].mxu0 }
 0x5a4   :  { %v792_v54 = vadd.f32 %v884_v25, %v791_v52  ;;  %v1052_v55 = vpop.f32.mrb[13].mxu0 }
 0x5a5   :  { %v794_v56 = vpop.f32.mrb[14].mxu0 }
 0x5a6   :  { %v802_v57 = vsub.f32 %v610_v27, %v792_v54  ;;  %798 = vst [vmem:[#allocation14] sm:$0xff] %v792_v54  ;;  %v1053_v58 = vpop.f32.mrb[15].mxu0 }
 0x5a8   :  { %v803_v59 = vadd.f32 1e-06, %v802_v57 }
 0x5aa   :  { %v804_v60 = vsel %vm801_vm10, %v803_v59, 0.0 }
 0x5ab   :  { %v805_v61 = vmul.f32 %v804_v60, %v804_v60 }
 0x5ad   :  { %806 = vadd.xlane.f32.xlu0 %v805_v61 }
 0x5ae   :  { %1252 = shalt.err (!%p1249_p10)
}
 0x5af   :  { %s1253_s2 = scalar_lea.hbm %s1726_s10, 128 }
 0x5b0   :  { %p1254_p11 = scmp.ne.s32.totalorder %s1726_s10, %s1253_s2  ;;  %p1257_p12 = scmp.lt.u32.totalorder %s1253_s2, %s1726_s10 }
 0x5b2   :  { %p1259_p13 = pnand %p1257_p12, %p1254_p11 }
 0x5b4   :  { %1262 = shalt.err (!%p1259_p13)
}
 0x5b5   :  { %826 = dma.vmem_to_hbm [thread:$0]  %s824_s23, 128, %s1726_s10, [#allocation4]  }
 0x5b6   :  { %s1263_s17 = scalar_lea.vmem %s834_s26, 128  ;;  %p1268_p1 = scmp.lt.s32.totalorder %s834_s26, %s834_s26 }
 0x5b7   :  { %p1264_p0 = scmp.ne.s32.totalorder %s834_s26, %s1263_s17  ;;  %p1269_p2 = scmp.lt.s32.totalorder %s1263_s17, %s1263_s17 }
 0x5b9   :  { %p1270_p3 = por %p1269_p2, %p1268_p1 }
 0x5bb   :  { %p1271_p4 = pnand %p1270_p3, %p1264_p0 }
 0x5bd   :  { %1274 = shalt.err (!%p1271_p4)
}
 0x5be   :  { %s1275_s21 = scalar_lea.hbm %s1727_s11, 128 }
 0x5bf   :  { %p1276_p5 = scmp.ne.s32.totalorder %s1727_s11, %s1275_s21  ;;  %p1279_p6 = scmp.lt.u32.totalorder %s1275_s21, %s1727_s11 }
 0x5c1   :  { %p1281_p7 = pnand %p1279_p6, %p1276_p5 }
 0x5c3   :  { %1284 = shalt.err (!%p1281_p7)
}
 0x5c4   :  { %836 = dma.vmem_to_hbm [thread:$0]  %s834_s26, 128, %s1727_s11, [#allocation15]   ;;  %vm815_vm12 = vcmask 7168  }
 0x63a   :  { %v807_v30 = vpop.xlane.xlu0 %806 }
 0x63b   :  { %1107 = vrsqrt.f32 %v807_v30  ;;  %vm810_vm11 = vcmp.eq.f32.partialorder %v807_v30, inf  ;;  %v813_v1 = vand.u32 2147483648, %v807_v30  ;;  %vm812_vm13 = vcmp.eq.f32.partialorder %v807_v30, 0.0 }
 0x645   :  { %v1108_v62 = vpop.eup %1107 }
 0x646   :  { %v809_v63 = vmul.f32 %v1108_v62, %v807_v30 }
 0x648   :  { %v811_v5 = vsel %vm810_vm11, %v807_v30, %v809_v63 }
 0x649   :  { %v814_v7 = vsel %vm812_vm13, %v813_v1, %v811_v5 }
 0x64a   :  { %816 = vst.msk [vmem:[%s1728_s12] sm:$0xff] %vm815_vm12, %v814_v7 }
 0x64b   :  { %1293 = dma.done.wait [#allocation4], 128  }
 0x64c   :  { %1294 = vsyncadd [#allocation4], 4294967168 }
 0x64d   :  { %1295 = dma.done.wait [#allocation15], 128  }
 0x64e   :  { %1296 = vsyncadd [#allocation15], 4294967168 }
 0x64f   :  { %847 = vsyncpa [#allocation3], 1 }
 0x650   :  { %848 = vsyncpa [#allocation6], 1 }
 0x651   :  { %849 = vsyncpa [#allocation9], 1 }
 0x652   :  { %850 = vsyncpa [#allocation12], 1 }
 0x653   :  { %851 = vsyncpa [#allocation4], 1 }
 0x654   :  { %852 = vsyncpa [#allocation15], 1 }

</bundles_post_ra>
